<compile_context>
chip_gen: v5e
topology: v5e:2x2
jax: 0.10.0
libtpu: 0.0.40
codegen_flags: <defaults>
</compile_context>

<pallas_src>
import jax
import jax.numpy as jnp
from jax.experimental import pallas as pl
from jax.experimental.pallas import tpu as pltpu


def _attn_decode_kernel(ids_ref, h0_ref, enc_ref, encT_ref, emb_ref,
                        wqk_ref, bqk_ref, wx4_ref, wh4_ref, b4_ref,
                        wout_ref, bout_ref,
                        logp_ref, hc_ref, attn_ref,
                        h_scr):
    t = pl.program_id(0)
    B, H = h0_ref.shape
    V = emb_ref.shape[0]
    BL = encT_ref.shape[1]
    L = BL // B
    dt = emb_ref.dtype                    # MXU operand dtype (bf16 fast / f32 check)

    # Recurrent hidden state lives in VMEM scratch for the whole decode sequence.
    @pl.when(t == 0)
    def _():
        h_scr[...] = h0_ref[...]

    h_prev = h_scr[...]                                              # (B, H) f32
    h_mx = h_prev.astype(dt)

    # ---- 1. embedding lookup: one-hot @ table (single MXU push, no gather) ----
    ids = ids_ref[0]                                                 # (B, 1) int32
    lane = jax.lax.broadcasted_iota(jnp.int32, (B, V), 1)
    onehot = (lane == ids).astype(dt)                                # (B, V)
    x = jnp.dot(onehot, emb_ref[...], preferred_element_type=jnp.float32)    # (B, H)
    # TODO(synk): dropout(p=0.1) on the embedding is identity in eval mode; a
    # training-mode forward would mask with pltpu.prng_seed / prng_random_bits.

    # ---- 2. attention (W_qk = Wq@Wk^T folded offline; q.bk term is constant over
    #         the sequence axis so it cancels in the softmax and is dropped) ----
    qk = jnp.dot(h_mx, wqk_ref[...], preferred_element_type=jnp.float32) + bqk_ref[...]
    scores = jnp.dot(qk.astype(dt), encT_ref[...],
                     preferred_element_type=jnp.float32)             # (B, B*L)
    # batch row b only owns columns [b*L, (b+1)*L) of the flattened encoder slab
    col = jax.lax.broadcasted_iota(jnp.int32, (B, BL), 1)
    row = jax.lax.broadcasted_iota(jnp.int32, (B, BL), 0)
    valid = (col >= row * L) & (col < (row + 1) * L)
    scores = jnp.where(valid, scores, -1e30)
    m = jnp.max(scores, axis=-1, keepdims=True)
    e = jnp.exp(scores - m)                                          # exactly 0 when masked
    attn = e * pl.reciprocal(jnp.sum(e, axis=-1, keepdims=True), approx=True)
    ctx = jnp.dot(attn.astype(dt), enc_ref[...],
                  preferred_element_type=jnp.float32)                # (B, H)

    # ---- 3. SimpleLSTM cell: wx/wh kept split (no concat), 4 gates per matmul ----
    gates = (jnp.dot(x.astype(dt), wx4_ref[...], preferred_element_type=jnp.float32)
             + jnp.dot(h_mx, wh4_ref[...], preferred_element_type=jnp.float32)
             + b4_ref[...])                                          # (B, 4H), [i,f,o,g]
    i_t = jax.nn.sigmoid(gates[:, 0 * H:1 * H])
    f_t = jax.nn.sigmoid(gates[:, 1 * H:2 * H])
    o_t = jax.nn.sigmoid(gates[:, 2 * H:3 * H])
    g_t = jnp.tanh(gates[:, 3 * H:4 * H])
    c_t = f_t * ctx + i_t * g_t          # attention context is the previous cell state
    h_t = o_t * jnp.tanh(c_t)

    # ---- 4. output projection + log-softmax (lane-dense V = 128) ----
    logits = jnp.dot(h_t.astype(dt), wout_ref[...],
                     preferred_element_type=jnp.float32) + bout_ref[...]      # (B, V)
    lm = jnp.max(logits, axis=-1, keepdims=True)
    sh = logits - lm
    lse = jnp.log(jnp.sum(jnp.exp(sh), axis=-1, keepdims=True))
    logp_ref[0] = (sh - lse).astype(logp_ref.dtype)

    hc_ref[0] = jnp.concatenate([h_t, c_t], axis=-1).astype(hc_ref.dtype)
    attn_ref[0] = attn.astype(attn_ref.dtype)

    h_scr[...] = h_t                     # carry to the next decode step


def attn_seq_decoder_decode(ids_seq, h0, encoder_outputs, packed):
    """Runs T teacher-forced AttnSeqDecoder.forward steps in ONE pallas_call.

    ids_seq: (T, B) int32 input token at each step.
    h0:      (B, H) initial hidden state (the initial cell state is discarded by the
             reference module, so it is not an argument).
    encoder_outputs: (B, L, H).
    Returns per-step (log_softmax (T,B,V), h_t (T,B,H), c_t (T,B,H), attn (T,B,L));
    each step t reproduces AttnSeqDecoder.forward(ids_seq[t], (h_{t-1}, .), enc).
    """
    T, B = ids_seq.shape
    H = h0.shape[1]
    L = encoder_outputs.shape[1]
    V = packed["emb"].shape[0]
    dt = packed["emb"].dtype
    BL = B * L

    ids3d = ids_seq.reshape(T, B, 1).astype(jnp.int32)
    enc2d = encoder_outputs.reshape(BL, H).astype(dt)     # (B*L, H) for ctx matmul
    encT = enc2d.T                                        # (H, B*L) for scores matmul
    h0 = h0.astype(jnp.float32)

    isz = jnp.dtype(dt).itemsize
    flops = 2 * T * B * H * (V + H + 2 * BL + 8 * H + V)
    transcendentals = T * B * (BL + V + 5 * H + 2)
    bytes_accessed = (isz * (V * H + H * H + 8 * H * H + H * V + 2 * BL * H)
                      + 4 * (6 * H + V + B * H + T * B * (1 + V + 2 * H + BL)))

    logp, hc, attn_all = pl.pallas_call(
        _attn_decode_kernel,
        grid=(T,),
        in_specs=[
            pl.BlockSpec((1, B, 1), lambda t: (t, 0, 0)),    # token ids, one step/iter
            pl.BlockSpec((B, H), lambda t: (0, 0)),          # initial hidden state
            pl.BlockSpec((BL, H), lambda t: (0, 0)),         # encoder outputs (flat)
            pl.BlockSpec((H, BL), lambda t: (0, 0)),         # encoder outputs (transposed)
            pl.BlockSpec((V, H), lambda t: (0, 0)),          # embedding table
            pl.BlockSpec((H, H), lambda t: (0, 0)),          # W_qk = Wq @ Wk^T
            pl.BlockSpec((1, H), lambda t: (0, 0)),          # b_qk = bq @ Wk^T
            pl.BlockSpec((H, 4 * H), lambda t: (0, 0)),      # wx (4 gates)
            pl.BlockSpec((H, 4 * H), lambda t: (0, 0)),      # wh (4 gates)
            pl.BlockSpec((1, 4 * H), lambda t: (0, 0)),      # fused LSTM bias
            pl.BlockSpec((H, V), lambda t: (0, 0)),          # output projection
            pl.BlockSpec((1, V), lambda t: (0, 0)),          # output bias
        ],
        out_specs=(
            pl.BlockSpec((1, B, V), lambda t: (t, 0, 0)),
            pl.BlockSpec((1, B, 2 * H), lambda t: (t, 0, 0)),
            pl.BlockSpec((1, B, BL), lambda t: (t, 0, 0)),
        ),
        out_shape=(
            jax.ShapeDtypeStruct((T, B, V), jnp.float32),     # log_softmax per step
            jax.ShapeDtypeStruct((T, B, 2 * H), jnp.float32), # [h_t | c_t] per step
            jax.ShapeDtypeStruct((T, B, BL), jnp.float32),    # masked attn slab per step
        ),
        scratch_shapes=[pltpu.VMEM((B, H), jnp.float32)],     # recurrent h carry
        compiler_params=pltpu.CompilerParams(dimension_semantics=("arbitrary",)),
        cost_estimate=pl.CostEstimate(flops=flops, transcendentals=transcendentals,
                                      bytes_accessed=bytes_accessed),
    )(ids3d, h0, enc2d, encT, packed["emb"],
      packed["w_qk"], packed["b_qk"], packed["wx4"], packed["wh4"], packed["b4"],
      packed["w_out"], packed["b_out"])

    h_seq = hc[..., :H]
    c_seq = hc[..., H:]
    bidx = jnp.arange(B)
    attn = attn_all.reshape(T, B, B, L)[:, bidx, bidx, :]     # compact (T, B, L)
    return logp, h_seq, c_seq, attn


def make_params(key, hidden, vocab):
    """Synthetic params matching the torch layers (weights stored (in, out))."""
    H, V = hidden, vocab
    ks = jax.random.split(key, 11)
    s = 1.0 / jnp.sqrt(jnp.float32(H))
    u = lambda k, shape: jax.random.uniform(k, shape, jnp.float32, -s, s)
    return dict(
        emb=jax.random.normal(ks[0], (V, H), jnp.float32),
        wq=u(ks[1], (H, H)), bq=u(ks[2], (H,)),
        wk=u(ks[3], (H, H)), bk=u(ks[4], (H,)),
        # SimpleLSTM: the 8 Linear layers packed along the output axis, order [i,f,o,g]
        wx4=u(ks[5], (H, 4 * H)), bx4=u(ks[6], (4 * H,)),
        wh4=u(ks[7], (H, 4 * H)), bh4=u(ks[8], (4 * H,)),
        w_out=u(ks[9], (H, V)), b_out=u(ks[10], (V,)),
    )


def pack_params(p, mxu_dtype=jnp.bfloat16):
    """One-time weight packing / offline folds (outside the hot decode loop).
    MXU operands go to `mxu_dtype`; biases stay f32 (added to f32 accumulators)."""
    dt = mxu_dtype
    return dict(
        emb=p["emb"].astype(dt),
        # fold: query.key = (h @ (Wq@Wk^T) + bq@Wk^T) . enc  [+ query.bk, which is
        # constant over the sequence axis and cancels in the softmax -> dropped]
        w_qk=(p["wq"] @ p["wk"].T).astype(dt),
        b_qk=(p["bq"] @ p["wk"].T).reshape(1, -1).astype(jnp.float32),
        wx4=p["wx4"].astype(dt), wh4=p["wh4"].astype(dt),
        b4=(p["bx4"] + p["bh4"]).reshape(1, -1).astype(jnp.float32),
        w_out=p["w_out"].astype(dt),
        b_out=p["b_out"].reshape(1, -1).astype(jnp.float32),
    )


def _reference_decode(ids_seq, h0, enc, p):
    """Pure-JAX reference: the literal PyTorch AttnSeqDecoder.forward math, applied
    step by step with teacher-forced ids (the module discards the incoming cell
    state, so only h is carried)."""
    H = h0.shape[1]
    logps, hs, cs, attns = [], [], [], []
    h_prev = h0
    for t in range(ids_seq.shape[0]):
        x = p["emb"][ids_seq[t]]                           # emb + eval-mode dropout
        query = h_prev @ p["wq"] + p["bq"]
        key = jnp.einsum("blh,hk->blk", enc, p["wk"]) + p["bk"]
        scores = jnp.einsum("bh,blh->bl", query, key)
        attn = jax.nn.softmax(scores, axis=-1)
        ctx = jnp.einsum("bl,blh->bh", attn, enc)          # context -> LSTM cell state
        gates = x @ p["wx4"] + p["bx4"] + h_prev @ p["wh4"] + p["bh4"]
        i_t = jax.nn.sigmoid(gates[:, 0 * H:1 * H])
        f_t = jax.nn.sigmoid(gates[:, 1 * H:2 * H])
        o_t = jax.nn.sigmoid(gates[:, 2 * H:3 * H])
        g_t = jnp.tanh(gates[:, 3 * H:4 * H])
        c_t = f_t * ctx + i_t * g_t
        h_t = o_t * jnp.tanh(c_t)
        logits = h_t @ p["w_out"] + p["b_out"]
        logps.append(jnp.log(jax.nn.softmax(logits, axis=-1)))
        hs.append(h_t)
        cs.append(c_t)
        attns.append(attn)
        h_prev = h_t
    return jnp.stack(logps), jnp.stack(hs), jnp.stack(cs), jnp.stack(attns)


if __name__ == "__main__":
    B = 8            # fill f32 sublanes
    HIDDEN = 32
    SEQ_LEN = 15     # SEQ_MAX_LEN in the reference module
    VOCAB = 128      # output_size; lane-dense log-softmax output
    STEPS = 6        # teacher-forced decode steps fused into one pallas_call

    key = jax.random.PRNGKey(0)
    k_id, k_h, k_enc, k_p = jax.random.split(key, 4)
    ids_seq = jax.random.randint(k_id, (STEPS, B), 0, VOCAB, dtype=jnp.int32)
    h0 = jax.random.normal(k_h, (B, HIDDEN), jnp.float32)
    enc_out = jax.random.normal(k_enc, (B, SEQ_LEN, HIDDEN), jnp.float32)
    params = make_params(k_p, HIDDEN, VOCAB)

    ref = _reference_decode(ids_seq, h0, enc_out, params)

    # Structural check: f32 MXU operands.  Tolerance budget covers the offline W_qk
    # fold, the dropped (softmax-invariant) q.bk term and the approximate softmax
    # reciprocal compounded over STEPS recurrent steps; real semantic bugs (gate
    # order, transposes, softmax axis) would be O(0.1 - 1).
    out_f32 = attn_seq_decoder_decode(ids_seq, h0, enc_out,
                                      pack_params(params, jnp.float32))
    out_f32 = jax.block_until_ready(out_f32)
    for got, want, name in zip(out_f32, ref, ("log_softmax", "h_t", "c_t", "attn")):
        assert got.shape == want.shape, f"{name} shape {got.shape} != {want.shape}"
        assert jnp.allclose(got, want, atol=2e-2, rtol=2e-2), f"f32 {name} mismatch"

    # Fast path: bf16 MXU operands (f32 accumulation, f32 elementwise/EUP math —
    # v5e-safe).  Loose tolerance only guards against NaN / structural garbage;
    # the f32 run above is the tight correctness check.
    out_bf16 = attn_seq_decoder_decode(ids_seq, h0, enc_out,
                                       pack_params(params, jnp.bfloat16))
    out_bf16 = jax.block_until_ready(out_bf16)
    for got, want, name in zip(out_bf16, ref, ("log_softmax", "h_t", "c_t", "attn")):
        assert jnp.allclose(got, want, atol=2e-1, rtol=2e-1), f"bf16 {name} mismatch"

    print("KERNEL_OK")
</pallas_src>

<mosaic_0001>
module attributes {stable_mosaic.version = 11 : i64} {
  func.func @_attn_decode_kernel(%arg0: i32, %arg1: memref<1x8x1xi32, #tpu.memory_space<vmem>>, %arg2: memref<8x32xf32, #tpu.memory_space<vmem>>, %arg3: memref<120x32xf32, #tpu.memory_space<vmem>>, %arg4: memref<32x120xf32, #tpu.memory_space<vmem>>, %arg5: memref<128x32xf32, #tpu.memory_space<vmem>>, %arg6: memref<32x32xf32, #tpu.memory_space<vmem>>, %arg7: memref<1x32xf32, #tpu.memory_space<vmem>>, %arg8: memref<32x128xf32, #tpu.memory_space<vmem>>, %arg9: memref<32x128xf32, #tpu.memory_space<vmem>>, %arg10: memref<1x128xf32, #tpu.memory_space<vmem>>, %arg11: memref<32x128xf32, #tpu.memory_space<vmem>>, %arg12: memref<1x128xf32, #tpu.memory_space<vmem>>, %arg13: memref<1x8x128xf32, #tpu.memory_space<vmem>>, %arg14: memref<1x8x64xf32, #tpu.memory_space<vmem>>, %arg15: memref<1x8x120xf32, #tpu.memory_space<vmem>>, %arg16: memref<8x32xf32, #tpu.memory_space<vmem>>) attributes {dimension_semantics = [#tpu.dimension_semantics<arbitrary>], iteration_bounds = array<i64: 6>, scalar_prefetch = 0 : i64, scratch_operands = 1 : i64, tpu.core_type = #tpu.core_type<tc>, window_params = [{transform_indices = @transform_0, window_bounds = array<i64: 1, 8, 1>}, {pipeline_mode = #tpu.pipeline_mode<synchronous>, transform_indices = @transform_1, window_bounds = array<i64: 8, 32>}, {pipeline_mode = #tpu.pipeline_mode<synchronous>, transform_indices = @transform_2, window_bounds = array<i64: 120, 32>}, {pipeline_mode = #tpu.pipeline_mode<synchronous>, transform_indices = @transform_3, window_bounds = array<i64: 32, 120>}, {pipeline_mode = #tpu.pipeline_mode<synchronous>, transform_indices = @transform_4, window_bounds = array<i64: 128, 32>}, {pipeline_mode = #tpu.pipeline_mode<synchronous>, transform_indices = @transform_5, window_bounds = array<i64: 32, 32>}, {pipeline_mode = #tpu.pipeline_mode<synchronous>, transform_indices = @transform_6, window_bounds = array<i64: 1, 32>}, {pipeline_mode = #tpu.pipeline_mode<synchronous>, transform_indices = @transform_7, window_bounds = array<i64: 32, 128>}, {pipeline_mode = #tpu.pipeline_mode<synchronous>, transform_indices = @transform_8, window_bounds = array<i64: 32, 128>}, {pipeline_mode = #tpu.pipeline_mode<synchronous>, transform_indices = @transform_9, window_bounds = array<i64: 1, 128>}, {pipeline_mode = #tpu.pipeline_mode<synchronous>, transform_indices = @transform_10, window_bounds = array<i64: 32, 128>}, {pipeline_mode = #tpu.pipeline_mode<synchronous>, transform_indices = @transform_11, window_bounds = array<i64: 1, 128>}, {transform_indices = @transform_12, window_bounds = array<i64: 1, 8, 128>}, {transform_indices = @transform_13, window_bounds = array<i64: 1, 8, 64>}, {transform_indices = @transform_14, window_bounds = array<i64: 1, 8, 120>}]} {
    %c0_i32 = arith.constant 0 : i32
    %0 = arith.cmpi eq, %arg0, %c0_i32 : i32
    %1 = arith.extui %0 : i1 to i32
    %c0_i32_0 = arith.constant 0 : i32
    %2 = arith.cmpi ne, %1, %c0_i32_0 : i32
    scf.if %2 {
      %c0_51 = arith.constant 0 : index
      %c0_52 = arith.constant 0 : index
      %104 = vector.load %arg2[%c0_51, %c0_52] : memref<8x32xf32, #tpu.memory_space<vmem>>, vector<8x32xf32>
      %c0_53 = arith.constant 0 : index
      %c0_54 = arith.constant 0 : index
      %105 = vector.load %arg16[%c0_53, %c0_54] : memref<8x32xf32, #tpu.memory_space<vmem>>, vector<8x32xf32>
      tpu.vector_store %arg16[%c0_53, %c0_54], %104 {strides = array<i32>} : memref<8x32xf32, #tpu.memory_space<vmem>>, vector<8x32xf32>,
    } else {
    }
    %c0 = arith.constant 0 : index
    %c0_1 = arith.constant 0 : index
    %3 = vector.load %arg16[%c0, %c0_1] : memref<8x32xf32, #tpu.memory_space<vmem>>, vector<8x32xf32>
    %c0_2 = arith.constant 0 : index
    %c0_3 = arith.constant 0 : index
    %c0_4 = arith.constant 0 : index
    %4 = vector.load %arg1[%c0_2, %c0_3, %c0_4] : memref<1x8x1xi32, #tpu.memory_space<vmem>>, vector<1x8x1xi32>
    %5 = vector.shape_cast %4 : vector<1x8x1xi32> to vector<8x1xi32>
    %6 = tpu.iota {dimensions = array<i32: 1>} : vector<8x128xi32>
    %7 = vector.broadcast %5 : vector<8x1xi32> to vector<8x128xi32>
    %8 = arith.cmpi eq, %6, %7 : vector<8x128xi32>
    %9 = arith.extui %8 : vector<8x128xi1> to vector<8x128xi32>
    %10 = arith.sitofp %9 : vector<8x128xi32> to vector<8x128xf32>
    %c0_5 = arith.constant 0 : index
    %c0_6 = arith.constant 0 : index
    %11 = vector.load %arg5[%c0_5, %c0_6] : memref<128x32xf32, #tpu.memory_space<vmem>>, vector<128x32xf32>
    %cst = arith.constant dense<0.000000e+00> : vector<8x32xf32>
    %12 = tpu.matmul %10, %11, %cst {dimension_numbers = #tpu.dot_dimension_numbers<[1], [0], [0], [1], [0, 0, 1, 1], [], []>} : vector<8x128xf32>, vector<128x32xf32>, vector<8x32xf32> -> vector<8x32xf32>
    %c0_7 = arith.constant 0 : index
    %c0_8 = arith.constant 0 : index
    %13 = vector.load %arg6[%c0_7, %c0_8] : memref<32x32xf32, #tpu.memory_space<vmem>>, vector<32x32xf32>
    %cst_9 = arith.constant dense<0.000000e+00> : vector<8x32xf32>
    %14 = tpu.matmul %3, %13, %cst_9 {dimension_numbers = #tpu.dot_dimension_numbers<[1], [0], [0], [1], [0, 0, 1, 1], [], []>} : vector<8x32xf32>, vector<32x32xf32>, vector<8x32xf32> -> vector<8x32xf32>
    %c0_10 = arith.constant 0 : index
    %c0_11 = arith.constant 0 : index
    %15 = vector.load %arg7[%c0_10, %c0_11] : memref<1x32xf32, #tpu.memory_space<vmem>>, vector<1x32xf32>
    %16 = vector.broadcast %15 : vector<1x32xf32> to vector<8x32xf32>
    %17 = arith.addf %14, %16 : vector<8x32xf32>
    %c0_12 = arith.constant 0 : index
    %c0_13 = arith.constant 0 : index
    %18 = vector.load %arg4[%c0_12, %c0_13] : memref<32x120xf32, #tpu.memory_space<vmem>>, vector<32x120xf32>
    %cst_14 = arith.constant dense<0.000000e+00> : vector<8x120xf32>
    %19 = tpu.matmul %17, %18, %cst_14 {dimension_numbers = #tpu.dot_dimension_numbers<[1], [0], [0], [1], [0, 0, 1, 1], [], []>} : vector<8x32xf32>, vector<32x120xf32>, vector<8x120xf32> -> vector<8x120xf32>
    %20 = tpu.iota {dimensions = array<i32: 1>} : vector<8x120xi32>
    %21 = tpu.iota {dimensions = array<i32: 0>} : vector<8x120xi32>
    %c15_i32 = arith.constant 15 : i32
    %22 = vector.broadcast %c15_i32 : i32 to vector<8x120xi32>
    %23 = arith.muli %21, %22 : vector<8x120xi32>
    %24 = arith.cmpi sge, %20, %23 : vector<8x120xi32>
    %c1_i32 = arith.constant 1 : i32
    %25 = vector.broadcast %c1_i32 : i32 to vector<8x120xi32>
    %26 = arith.addi %21, %25 : vector<8x120xi32>
    %c15_i32_15 = arith.constant 15 : i32
    %27 = vector.broadcast %c15_i32_15 : i32 to vector<8x120xi32>
    %28 = arith.muli %26, %27 : vector<8x120xi32>
    %29 = arith.cmpi slt, %20, %28 : vector<8x120xi32>
    %30 = arith.andi %24, %29 : vector<8x120xi1>
    %cst_16 = arith.constant -1.000000e+30 : f32
    %31 = vector.broadcast %cst_16 : f32 to vector<8x120xf32>
    %32 = arith.select %30, %19, %31 : vector<8x120xi1>, vector<8x120xf32>
    %cst_17 = arith.constant dense<0xFF800000> : vector<8xf32>
    %33 = vector.multi_reduction <maximumf>, %32, %cst_17 [1] : vector<8x120xf32> to vector<8xf32>
    %34 = vector.shape_cast %33 : vector<8xf32> to vector<8x1xf32>
    %35 = vector.broadcast %34 : vector<8x1xf32> to vector<8x120xf32>
    %36 = arith.subf %32, %35 : vector<8x120xf32>
    %37 = math.exp %36 : vector<8x120xf32>
    %cst_18 = arith.constant dense<0.000000e+00> : vector<8xf32>
    %38 = vector.multi_reduction <add>, %37, %cst_18 [1] : vector<8x120xf32> to vector<8xf32>
    %39 = vector.shape_cast %38 : vector<8xf32> to vector<8x1xf32>
    %40 = tpu.reciprocal %39 {approx = true} : vector<8x1xf32> -> vector<8x1xf32>
    %41 = vector.broadcast %40 : vector<8x1xf32> to vector<8x120xf32>
    %42 = arith.mulf %37, %41 : vector<8x120xf32>
    %c0_19 = arith.constant 0 : index
    %c0_20 = arith.constant 0 : index
    %43 = vector.load %arg3[%c0_19, %c0_20] : memref<120x32xf32, #tpu.memory_space<vmem>>, vector<120x32xf32>
    %cst_21 = arith.constant dense<0.000000e+00> : vector<8x32xf32>
    %44 = tpu.matmul %42, %43, %cst_21 {dimension_numbers = #tpu.dot_dimension_numbers<[1], [0], [0], [1], [0, 0, 1, 1], [], []>} : vector<8x120xf32>, vector<120x32xf32>, vector<8x32xf32> -> vector<8x32xf32>
    %c0_22 = arith.constant 0 : index
    %c0_23 = arith.constant 0 : index
    %45 = vector.load %arg8[%c0_22, %c0_23] : memref<32x128xf32, #tpu.memory_space<vmem>>, vector<32x128xf32>
    %cst_24 = arith.constant dense<0.000000e+00> : vector<8x128xf32>
    %46 = tpu.matmul %12, %45, %cst_24 {dimension_numbers = #tpu.dot_dimension_numbers<[1], [0], [0], [1], [0, 0, 1, 1], [], []>} : vector<8x32xf32>, vector<32x128xf32>, vector<8x128xf32> -> vector<8x128xf32>
    %c0_25 = arith.constant 0 : index
    %c0_26 = arith.constant 0 : index
    %47 = vector.load %arg9[%c0_25, %c0_26] : memref<32x128xf32, #tpu.memory_space<vmem>>, vector<32x128xf32>
    %cst_27 = arith.constant dense<0.000000e+00> : vector<8x128xf32>
    %48 = tpu.matmul %3, %47, %cst_27 {dimension_numbers = #tpu.dot_dimension_numbers<[1], [0], [0], [1], [0, 0, 1, 1], [], []>} : vector<8x32xf32>, vector<32x128xf32>, vector<8x128xf32> -> vector<8x128xf32>
    %49 = arith.addf %46, %48 : vector<8x128xf32>
    %c0_28 = arith.constant 0 : index
    %c0_29 = arith.constant 0 : index
    %50 = vector.load %arg10[%c0_28, %c0_29] : memref<1x128xf32, #tpu.memory_space<vmem>>, vector<1x128xf32>
    %51 = vector.broadcast %50 : vector<1x128xf32> to vector<8x128xf32>
    %52 = arith.addf %49, %51 : vector<8x128xf32>
    %53 = vector.extract_strided_slice %52 {offsets = [0, 0], sizes = [8, 32], strides = [1, 1]} : vector<8x128xf32> to vector<8x32xf32>
    %54 = arith.negf %53 : vector<8x32xf32>
    %55 = math.exp %54 : vector<8x32xf32>
    %cst_30 = arith.constant 1.000000e+00 : f32
    %56 = vector.broadcast %cst_30 : f32 to vector<8x32xf32>
    %57 = arith.addf %56, %55 : vector<8x32xf32>
    %58 = arith.divf %56, %57 : vector<8x32xf32>
    %59 = vector.extract_strided_slice %52 {offsets = [0, 32], sizes = [8, 32], strides = [1, 1]} : vector<8x128xf32> to vector<8x32xf32>
    %60 = arith.negf %59 : vector<8x32xf32>
    %61 = math.exp %60 : vector<8x32xf32>
    %cst_31 = arith.constant 1.000000e+00 : f32
    %62 = vector.broadcast %cst_31 : f32 to vector<8x32xf32>
    %63 = arith.addf %62, %61 : vector<8x32xf32>
    %64 = arith.divf %62, %63 : vector<8x32xf32>
    %65 = vector.extract_strided_slice %52 {offsets = [0, 64], sizes = [8, 32], strides = [1, 1]} : vector<8x128xf32> to vector<8x32xf32>
    %66 = arith.negf %65 : vector<8x32xf32>
    %67 = math.exp %66 : vector<8x32xf32>
    %cst_32 = arith.constant 1.000000e+00 : f32
    %68 = vector.broadcast %cst_32 : f32 to vector<8x32xf32>
    %69 = arith.addf %68, %67 : vector<8x32xf32>
    %70 = arith.divf %68, %69 : vector<8x32xf32>
    %71 = vector.extract_strided_slice %52 {offsets = [0, 96], sizes = [8, 32], strides = [1, 1]} : vector<8x128xf32> to vector<8x32xf32>
    %72 = math.tanh %71 : vector<8x32xf32>
    %73 = arith.mulf %64, %44 : vector<8x32xf32>
    %74 = arith.mulf %58, %72 : vector<8x32xf32>
    %75 = arith.addf %73, %74 : vector<8x32xf32>
    %76 = math.tanh %75 : vector<8x32xf32>
    %77 = arith.mulf %70, %76 : vector<8x32xf32>
    %c0_33 = arith.constant 0 : index
    %c0_34 = arith.constant 0 : index
    %78 = vector.load %arg11[%c0_33, %c0_34] : memref<32x128xf32, #tpu.memory_space<vmem>>, vector<32x128xf32>
    %cst_35 = arith.constant dense<0.000000e+00> : vector<8x128xf32>
    %79 = tpu.matmul %77, %78, %cst_35 {dimension_numbers = #tpu.dot_dimension_numbers<[1], [0], [0], [1], [0, 0, 1, 1], [], []>} : vector<8x32xf32>, vector<32x128xf32>, vector<8x128xf32> -> vector<8x128xf32>
    %c0_36 = arith.constant 0 : index
    %c0_37 = arith.constant 0 : index
    %80 = vector.load %arg12[%c0_36, %c0_37] : memref<1x128xf32, #tpu.memory_space<vmem>>, vector<1x128xf32>
    %81 = vector.broadcast %80 : vector<1x128xf32> to vector<8x128xf32>
    %82 = arith.addf %79, %81 : vector<8x128xf32>
    %cst_38 = arith.constant dense<0xFF800000> : vector<8xf32>
    %83 = vector.multi_reduction <maximumf>, %82, %cst_38 [1] : vector<8x128xf32> to vector<8xf32>
    %84 = vector.shape_cast %83 : vector<8xf32> to vector<8x1xf32>
    %85 = vector.broadcast %84 : vector<8x1xf32> to vector<8x128xf32>
    %86 = arith.subf %82, %85 : vector<8x128xf32>
    %87 = math.exp %86 : vector<8x128xf32>
    %cst_39 = arith.constant dense<0.000000e+00> : vector<8xf32>
    %88 = vector.multi_reduction <add>, %87, %cst_39 [1] : vector<8x128xf32> to vector<8xf32>
    %89 = vector.shape_cast %88 : vector<8xf32> to vector<8x1xf32>
    %90 = math.log %89 : vector<8x1xf32>
    %91 = vector.broadcast %90 : vector<8x1xf32> to vector<8x128xf32>
    %92 = arith.subf %86, %91 : vector<8x128xf32>
    %c0_40 = arith.constant 0 : index
    %c0_41 = arith.constant 0 : index
    %c0_42 = arith.constant 0 : index
    %93 = vector.load %arg13[%c0_40, %c0_41, %c0_42] : memref<1x8x128xf32, #tpu.memory_space<vmem>>, vector<1x8x128xf32>
    %94 = vector.shape_cast %93 : vector<1x8x128xf32> to vector<8x128xf32>
    %95 = vector.shape_cast %92 : vector<8x128xf32> to vector<1x8x128xf32>
    tpu.vector_store %arg13[%c0_40, %c0_41, %c0_42], %95 {strides = array<i32>} : memref<1x8x128xf32, #tpu.memory_space<vmem>>, vector<1x8x128xf32>,
    %96 = tpu.concatenate %77, %75 in 1 : vector<8x32xf32>, vector<8x32xf32> -> vector<8x64xf32>
    %c0_43 = arith.constant 0 : index
    %c0_44 = arith.constant 0 : index
    %c0_45 = arith.constant 0 : index
    %97 = vector.load %arg14[%c0_43, %c0_44, %c0_45] : memref<1x8x64xf32, #tpu.memory_space<vmem>>, vector<1x8x64xf32>
    %98 = vector.shape_cast %97 : vector<1x8x64xf32> to vector<8x64xf32>
    %99 = vector.shape_cast %96 : vector<8x64xf32> to vector<1x8x64xf32>
    tpu.vector_store %arg14[%c0_43, %c0_44, %c0_45], %99 {strides = array<i32>} : memref<1x8x64xf32, #tpu.memory_space<vmem>>, vector<1x8x64xf32>,
    %c0_46 = arith.constant 0 : index
    %c0_47 = arith.constant 0 : index
    %c0_48 = arith.constant 0 : index
    %100 = vector.load %arg15[%c0_46, %c0_47, %c0_48] : memref<1x8x120xf32, #tpu.memory_space<vmem>>, vector<1x8x120xf32>
    %101 = vector.shape_cast %100 : vector<1x8x120xf32> to vector<8x120xf32>
    %102 = vector.shape_cast %42 : vector<8x120xf32> to vector<1x8x120xf32>
    tpu.vector_store %arg15[%c0_46, %c0_47, %c0_48], %102 {strides = array<i32>} : memref<1x8x120xf32, #tpu.memory_space<vmem>>, vector<1x8x120xf32>,
    %c0_49 = arith.constant 0 : index
    %c0_50 = arith.constant 0 : index
    %103 = vector.load %arg16[%c0_49, %c0_50] : memref<8x32xf32, #tpu.memory_space<vmem>>, vector<8x32xf32>
    tpu.vector_store %arg16[%c0_49, %c0_50], %77 {strides = array<i32>} : memref<8x32xf32, #tpu.memory_space<vmem>>, vector<8x32xf32>,
    return
  }
  func.func @transform_0(%arg0: i32) -> (i32, i32, i32) {
    %c0_i32 = arith.constant 0 : i32
    %c0_i32_0 = arith.constant 0 : i32
    %c0_i32_1 = arith.constant 0 : i32
    return %arg0, %c0_i32, %c0_i32_0 : i32, i32, i32
  }
  func.func @transform_1(%arg0: i32) -> (i32, i32) {
    %c0_i32 = arith.constant 0 : i32
    %c0_i32_0 = arith.constant 0 : i32
    %c0_i32_1 = arith.constant 0 : i32
    return %c0_i32, %c0_i32_0 : i32, i32
  }
  func.func @transform_2(%arg0: i32) -> (i32, i32) {
    %c0_i32 = arith.constant 0 : i32
    %c0_i32_0 = arith.constant 0 : i32
    %c0_i32_1 = arith.constant 0 : i32
    return %c0_i32, %c0_i32_0 : i32, i32
  }
  func.func @transform_3(%arg0: i32) -> (i32, i32) {
    %c0_i32 = arith.constant 0 : i32
    %c0_i32_0 = arith.constant 0 : i32
    %c0_i32_1 = arith.constant 0 : i32
    return %c0_i32, %c0_i32_0 : i32, i32
  }
  func.func @transform_4(%arg0: i32) -> (i32, i32) {
    %c0_i32 = arith.constant 0 : i32
    %c0_i32_0 = arith.constant 0 : i32
    %c0_i32_1 = arith.constant 0 : i32
    return %c0_i32, %c0_i32_0 : i32, i32
  }
  func.func @transform_5(%arg0: i32) -> (i32, i32) {
    %c0_i32 = arith.constant 0 : i32
    %c0_i32_0 = arith.constant 0 : i32
    %c0_i32_1 = arith.constant 0 : i32
    return %c0_i32, %c0_i32_0 : i32, i32
  }
  func.func @transform_6(%arg0: i32) -> (i32, i32) {
    %c0_i32 = arith.constant 0 : i32
    %c0_i32_0 = arith.constant 0 : i32
    %c0_i32_1 = arith.constant 0 : i32
    return %c0_i32, %c0_i32_0 : i32, i32
  }
  func.func @transform_7(%arg0: i32) -> (i32, i32) {
    %c0_i32 = arith.constant 0 : i32
    %c0_i32_0 = arith.constant 0 : i32
    %c0_i32_1 = arith.constant 0 : i32
    return %c0_i32, %c0_i32_0 : i32, i32
  }
  func.func @transform_8(%arg0: i32) -> (i32, i32) {
    %c0_i32 = arith.constant 0 : i32
    %c0_i32_0 = arith.constant 0 : i32
    %c0_i32_1 = arith.constant 0 : i32
    return %c0_i32, %c0_i32_0 : i32, i32
  }
  func.func @transform_9(%arg0: i32) -> (i32, i32) {
    %c0_i32 = arith.constant 0 : i32
    %c0_i32_0 = arith.constant 0 : i32
    %c0_i32_1 = arith.constant 0 : i32
    return %c0_i32, %c0_i32_0 : i32, i32
  }
  func.func @transform_10(%arg0: i32) -> (i32, i32) {
    %c0_i32 = arith.constant 0 : i32
    %c0_i32_0 = arith.constant 0 : i32
    %c0_i32_1 = arith.constant 0 : i32
    return %c0_i32, %c0_i32_0 : i32, i32
  }
  func.func @transform_11(%arg0: i32) -> (i32, i32) {
    %c0_i32 = arith.constant 0 : i32
    %c0_i32_0 = arith.constant 0 : i32
    %c0_i32_1 = arith.constant 0 : i32
    return %c0_i32, %c0_i32_0 : i32, i32
  }
  func.func @transform_12(%arg0: i32) -> (i32, i32, i32) {
    %c0_i32 = arith.constant 0 : i32
    %c0_i32_0 = arith.constant 0 : i32
    %c0_i32_1 = arith.constant 0 : i32
    return %arg0, %c0_i32, %c0_i32_0 : i32, i32, i32
  }
  func.func @transform_13(%arg0: i32) -> (i32, i32, i32) {
    %c0_i32 = arith.constant 0 : i32
    %c0_i32_0 = arith.constant 0 : i32
    %c0_i32_1 = arith.constant 0 : i32
    return %arg0, %c0_i32, %c0_i32_0 : i32, i32, i32
  }
  func.func @transform_14(%arg0: i32) -> (i32, i32, i32) {
    %c0_i32 = arith.constant 0 : i32
    %c0_i32_0 = arith.constant 0 : i32
    %c0_i32_1 = arith.constant 0 : i32
    return %arg0, %c0_i32, %c0_i32_0 : i32, i32, i32
  }
}

</mosaic_0001>

<bundles_post_ra>
// kernel: tpu_custom_call.1
= control target key start
LH: loop header
LB: loop body
LE: loop exit
PB: predicated region body
PF: predicated region fallthrough
CT: control target
= control target key end

     0   :  { %s1608_s0 = inlined_call_operand.vmem [shape: s32[6,8,1], index: 0, kind: input, shape index: {}]   ;;  %s1609_s1 = inlined_call_operand.vmem [shape: f32[8,32], index: 1, kind: input, shape index: {}]   ;;  %s1610_s2 = inlined_call_operand.vmem [shape: f32[120,32], index: 2, kind: input, shape index: {}]   ;;  %s1611_s3 = inlined_call_operand.vmem [shape: f32[32,120], index: 3, kind: input, shape index: {}]   ;;  %s1612_s4 = inlined_call_operand.vmem [shape: f32[128,32], index: 4, kind: input, shape index: {}]   ;;  %s1613_s5 = inlined_call_operand.vmem [shape: f32[32,32], index: 5, kind: input, shape index: {}]   ;;  %s1614_s6 = inlined_call_operand.vmem [shape: f32[1,32], index: 6, kind: input, shape index: {}]   ;;  %s1615_s7 = inlined_call_operand.vmem [shape: f32[32,128], index: 7, kind: input, shape index: {}]   ;;  %s1616_s8 = inlined_call_operand.vmem [shape: f32[32,128], index: 8, kind: input, shape index: {}]   ;;  %s1617_s9 = inlined_call_operand.vmem [shape: f32[1,128], index: 9, kind: input, shape index: {}]   ;;  %s1618_s10 = inlined_call_operand.vmem [shape: f32[32,128], index: 10, kind: input, shape index: {}]   ;;  %s1619_s11 = inlined_call_operand.vmem [shape: f32[1,128], index: 11, kind: input, shape index: {}]   ;;  %s1620_s12 = inlined_call_operand.hbm [shape: f32[6,8,128], index: 12, kind: output, shape index: {0}]   ;;  %s1621_s13 = inlined_call_operand.hbm [shape: f32[6,8,64], index: 13, kind: output, shape index: {1}]   ;;  %s1622_s14 = inlined_call_operand.hbm [shape: f32[6,8,120], index: 14, kind: output, shape index: {2}]  }
   0x1   :  { %1633 = sst [smem:[#allocation16_spill]] %s1608_s0 }
   0x2   :  { %1634 = sst [smem:[#allocation17_spill]] %s1609_s1 }
   0x3   :  { %20 = vsyncpa [#allocation4], 0 }
   0x4   :  { %22 = vsyncpa [#allocation4 + $0x1], 0 }
   0x5   :  { %23 = vsyncpa [#allocation6], 0 }
   0x6   :  { %25 = vsyncpa [#allocation6 + $0x1], 0  ;;  %s1277_s29 = smov 0   ;;  %s1279_s30 = smov 0  }
   0x7   :  { %s1281_s15 = smov 0   ;;  %s1283_s16 = smov 0  }
   0x8 LB: > { %1635 = sst [smem:[#allocation10_spill]] %s1184_s29  ;;  %s1298_s17 = sadd.s32 4294967295, %s1196_s16   ;;  %s1196_s16 = sphi %s1283_s16, %s1655_s16   ;;  %s1192_s15 = sphi %s1281_s15, %s1657_s15   ;;  %s1188_s30 = sphi %s1279_s30, %s1659_s30   ;;  %s1184_s29 = sphi %s1277_s29, %s1658_s29  }
   0x9   : > { %1636 = sst [smem:[#allocation11_spill]] %s1192_s15  ;;  %s1623_s18 = sadd.s32 4294967294, %s1196_s16  }
   0xa   : > { %1637 = sst [smem:[#allocation12_spill]] %s1196_s16  ;;  %s1302_s19 = sadd.s32 1, %s1196_s16  }
   0xb   : > { %1638 = sst [smem:[#allocation13_spill]] %s1302_s19  ;;  %s295_s20 = sadd.s32 1, %s1192_s15 }
   0xc   : > { %s292_s21 = ssub.s32 %s1196_s16, %s1302_s19  ;;  %p305_p0 = scmp.ne.s32.totalorder %s1192_s15, %s1188_s30 }
   0xd   : > { %p293_p1 = scmp.eq.s32.totalorder %s292_s21, 0  ;;  %p306_p2 = scmp.eq.s32.totalorder %s1298_s17, 5 }
   0xe   : > { %p311_p3 = scmp.ne.s32.totalorder %s1188_s30, %s1184_s29  ;;  %p312_p4 = scmp.eq.s32.totalorder %s1623_s18, 5 }
   0xf   : > { %s1315_s22 = scalar_select %p293_p1, %s1192_s15, %s295_s20  }
  0x10   : > { %p1317_p5 = por %p306_p2, %p305_p0  ;;  %p1321_p6 = por %p312_p4, %p311_p3 }
  0x11   : > { %1639 = sst [smem:[#allocation14_spill]] %s1315_s22  ;;  %p978_p7 = scmp.ge.s32.totalorder %s1196_s16, 1 }
  0x12   : > { %s1641_s24 = scalar_select %p1321_p6, 1, 0 }
  0x13   : > { %p422_p8 = scmp.lt.s32.totalorder %s1196_s16, 7 }
  0x14   : > { %1642 = sst [smem:[#allocation15_spill]] %s1641_s24 }
  0x15   : > { %p423_p9 = pnand %p978_p7, %p422_p8 }
  0x16   : > { %s1629_s25 = sand.u32 (!%p423_p9), 1, %s1188_s30   ;;  %p477_p10 = scmp.lt.s32.totalorder (!%p423_p9), %s1298_s17, 5 }
  0x17   : > { %426 = sbr.rel (%p423_p9) target bundleno = 1369 (0x559), region = 68  ;;  %s1331_s26 = sshll.u32 (!%p423_p9), %s1629_s25, 3 }
  0x18   : > { %s1643_s0 = sld [smem:[#allocation16_spill]] (!%p423_p9)  ;;  %s1632_s19 = scalar_lea.vmem (!%p423_p9), [#allocation7], %s1331_s26 }
  0x19   : > { %p983_p11 = scmp.ne.s32.totalorder (!%p423_p9), %s1298_s17, 0 }
  0x1c   : > { %s478_s27 = scalar_select %p477_p10, %s1298_s17, 5 }
  0x1d   : > { %484 = sbr.rel (%p983_p11) target bundleno = 37 (0x25), region = 72  ;;  %s1644_s1 = sld [smem:[#allocation17_spill]] (!%p983_p11) }
  0x1e   : > { %s982_s28 = sshll.u32 %s478_s27, 3 }
  0x1f   : > { %s480_s18 = scalar_lea.vmem %s1643_s0, %s982_s28 }
  0x22   : > { %vm486_vm0 = vcmask 261120  }
  0x23   : > { %v485_v0 = vld [vmem:[%s1644_s1] sm:$0xff] }
  0x24   : > { %487 = vst.msk [vmem:[#allocation2] sm:$0xff] %vm486_vm0, %v485_v0 }
  0x25 PF: > { %v537_v1 = vld [vmem:[%s1613_s5 + $0x18] sm:$0xff]  ;;  %v536_v2 = vld [vmem:[%s1613_s5 + $0x10] sm:$0xff]  ;;  %v535_v3 = vld [vmem:[%s1613_s5 + $0x8] sm:$0xff]  ;;  %v1198_v4 = vmov 0   ;;  %vm542_vm1 = vcmask 261120   ;;  %v490_v24 = vlaneseq  ;;  %v1199_v34 = vmov 1.0  }
  0x26   : > { %558 = vmatpush.msra.mxu1 %v537_v1  ;;  %1054 = vset.pattern.permute.xlu0 %v1198_v4  ;;  %v489_v5 = vld [vmem:[%s480_s18] sm:$0xff]  ;;  %v569_v6 = vld [vmem:[%s1611_s3 + $0x18] sm:$0xff]  ;;  %v568_v7 = vld [vmem:[%s1611_s3 + $0x10] sm:$0xff]  ;;  %vm602_vm6 = vcmask 982016   ;;  %s1200_s24 = smov 32   ;;  %vm795_vm11 = vcmask 523264  }
  0x27   : > { %493 = vperm.xlu0 %1054, %v489_v5   ;;  %585 = vmatpush.msra.mxu2 %v569_v6  ;;  %v534_v8 = vld [vmem:[%s1613_s5] sm:$0xff]  ;;  %v567_v10 = vld [vmem:[%s1611_s3 + $0x8] sm:$0xff]  ;;  %v513_v12 = vld [vmem:[%s1612_s4 + $0x78] sm:$0xff]  ;;  %v491_v27 = vand.u32 127, %v490_v24  ;;  %v594_v43 = vshrl.u32 %v490_v24, 7  ;;  %s1645_s21 = scalar_lea.vmem [#allocation5], %s1331_s26 }
  0x28   : > { %559 = vmatpush.msra.mxu1 %v536_v2  ;;  %v566_v11 = vld [vmem:[%s1611_s3] sm:$0xff]  ;;  %v512_v13 = vld [vmem:[%s1612_s4 + $0x70] sm:$0xff]  ;;  %514 = vmatpush.msra.mxu0 %v513_v12  ;;  %v511_v14 = vld [vmem:[%s1612_s4 + $0x68] sm:$0xff]  ;;  %s1530_s16 = sshll.u32 %s1298_s17, 3  ;;  %s804_s20 = sand.u32 1, %s1298_s17  }
  0x29   : > { %586 = vmatpush.msra.mxu2 %v568_v7  ;;  %v510_v15 = vld [vmem:[%s1612_s4 + $0x60] sm:$0xff]  ;;  %v509_v16 = vld [vmem:[%s1612_s4 + $0x58] sm:$0xff]  ;;  %v508_v17 = vld [vmem:[%s1612_s4 + $0x50] sm:$0xff]  ;;  %v597_v44 = vadd.s32 1, %v594_v43  ;;  %v595_v45 = vmul.u32 15, %v594_v43  ;;  %s834_s18 = scalar_lea.hbm %s1621_s13, %s1530_s16  ;;  %s1646_s22 = smov %s1645_s21 }
  0x2a   : > { %560 = vmatpush.msra.mxu1 %v535_v3  ;;  %515 = vmatpush.msra.mxu0 %v512_v13  ;;  %v507_v18 = vld [vmem:[%s1612_s4 + $0x48] sm:$0xff]  ;;  %v506_v19 = vld [vmem:[%s1612_s4 + $0x40] sm:$0xff]  ;;  %v505_v20 = vld [vmem:[%s1612_s4 + $0x38] sm:$0xff]  ;;  %s836_s28 = sshll.u32 %s1646_s22, 4  ;;  %s1094_s17 = scalar_lea.hbm %s1621_s13, 48  ;;  %s837_s28 = int_to_ptr.vmem [resolvable:$true] %s836_s28 }
  0x2b   : > { %v1362_v9 = vld [vmem:[#allocation2] sm:$0xff]  ;;  %587 = vmatpush.msra.mxu2 %v567_v10  ;;  %v504_v21 = vld [vmem:[%s1612_s4 + $0x30] sm:$0xff]  ;;  %v503_v22 = vld [vmem:[%s1612_s4 + $0x28] sm:$0xff]  ;;  %v598_v46 = vmul.u32 15, %v597_v44  ;;  %vm596_vm3 = vcmp.ge.s32.totalorder %v491_v27, %v595_v45 }
  0x2c   : > { %561 = vmatpush.msra.mxu1 %v534_v8  ;;  %516 = vmatpush.msra.mxu0 %v511_v14  ;;  %v502_v23 = vld [vmem:[%s1612_s4 + $0x20] sm:$0xff]  ;;  %v501_v25 = vld [vmem:[%s1612_s4 + $0x18] sm:$0xff]  ;;  %v500_v26 = vld [vmem:[%s1612_s4 + $0x10] sm:$0xff] }
  0x2d   : > { %986 = vmatmul.msk.f32.vlgmr.msra.gmra.mxu1 %vm542_vm1, %v1362_v9  ;;  %588 = vmatpush.msra.mxu2 %v566_v11  ;;  %v1055_v28 = vld [vmem:[%s1614_s6] ss:$0 sm:$0xff]  ;;  %v499_v29 = vld [vmem:[%s1612_s4 + $0x8] sm:$0xff]  ;;  %v655_v35 = vld [vmem:[%s1615_s7 + $0x18] sm:$0xff]  ;;  %vm599_vm4 = vcmp.lt.s32.totalorder %v491_v27, %v598_v46 }
  0x2e   : > { %517 = vmatpush.msra.mxu0 %v510_v15  ;;  %v498_v31 = vld [vmem:[%s1612_s4] sm:$0xff]  ;;  %v654_v36 = vld [vmem:[%s1615_s7 + $0x10] sm:$0xff]  ;;  %v659_v37 = vld [vmem:[%s1616_s8 + $0x18] sm:$0xff] }
  0x2f   : > { %695 = vmatpush.msrb.mxu2 %v655_v35  ;;  %v658_v38 = vld [vmem:[%s1616_s8 + $0x10] sm:$0xff]  ;;  %v653_v39 = vld [vmem:[%s1615_s7 + $0x8] sm:$0xff]  ;;  %672 = vmatpush.msrb.mxu1 %v659_v37  ;;  %v652_v41 = vld [vmem:[%s1615_s7] sm:$0xff] }
  0x30   : > { %518 = vmatpush.msra.mxu0 %v509_v16  ;;  %v657_v40 = vld [vmem:[%s1616_s8 + $0x8] sm:$0xff]  ;;  %v656_v42 = vld [vmem:[%s1616_s8] sm:$0xff]  ;;  %vm600_vm5 = vmand %vm596_vm3, %vm599_vm4 }
  0x31   : > { %696 = vmatpush.msrb.mxu2 %v654_v36  ;;  %673 = vmatpush.msrb.mxu1 %v658_v38  ;;  %v628_v54 = vld [vmem:[%s1610_s2 + $0x70] sm:$0xff]  ;;  %v627_v55 = vld [vmem:[%s1610_s2 + $0x68] sm:$0xff]  ;;  %v626_v56 = vld [vmem:[%s1610_s2 + $0x60] sm:$0xff] }
  0x32   : > { %519 = vmatpush.msra.mxu0 %v508_v17  ;;  %633 = vmatpush.msra.mxu3 %v628_v54  ;;  %v625_v57 = vld [vmem:[%s1610_s2 + $0x58] sm:$0xff]  ;;  %v624_v60 = vld [vmem:[%s1610_s2 + $0x50] sm:$0xff]  ;;  %v623_v61 = vld [vmem:[%s1610_s2 + $0x48] sm:$0xff] }
  0x33   : > { %697 = vmatpush.msrb.mxu2 %v653_v39  ;;  %674 = vmatpush.msrb.mxu1 %v657_v40  ;;  %v622_v62 = vld [vmem:[%s1610_s2 + $0x40] sm:$0xff]  ;;  %v621_v1 = vld [vmem:[%s1610_s2 + $0x38] sm:$0xff]  ;;  %v620_v2 = vld [vmem:[%s1610_s2 + $0x30] sm:$0xff] }
  0x34   : > { %520 = vmatpush.msra.mxu0 %v507_v18  ;;  %634 = vmatpush.msra.mxu3 %v627_v55  ;;  %v1056_v4 = vld [vmem:[%s1617_s9] ss:$0 sm:$0xff]  ;;  %v619_v5 = vld [vmem:[%s1610_s2 + $0x28] sm:$0xff]  ;;  %v616_v10 = vld [vmem:[%s1610_s2 + $0x10] sm:$0xff] }
  0x35   : > { %698 = vmatpush.msrb.mxu2 %v652_v41  ;;  %675 = vmatpush.msrb.mxu1 %v656_v42  ;;  %v618_v8 = vld [vmem:[%s1610_s2 + $0x20] sm:$0xff]  ;;  %v615_v11 = vld [vmem:[%s1610_s2 + $0x8] sm:$0xff]  ;;  %v752_v37 = vld [vmem:[%s1618_s10 + $0x18] sm:$0xff] }
  0x36   : > { %521 = vmatpush.msra.mxu0 %v506_v19  ;;  %989 = vmatmul.msk.f32.vlgmr.msrb.gmra.mxu1 %vm542_vm1, %v1362_v9  ;;  %v617_v9 = vld [vmem:[%s1610_s2 + $0x18] sm:$0xff]  ;;  %v614_v12 = vld [vmem:[%s1610_s2] sm:$0xff]  ;;  %v751_v38 = vld [vmem:[%s1618_s10 + $0x10] sm:$0xff] }
  0x37   : > { %635 = vmatpush.msra.mxu3 %v626_v56  ;;  %774 = vmatpush.msra.mxu1 %v752_v37  ;;  %v750_v39 = vld [vmem:[%s1618_s10 + $0x8] sm:$0xff]  ;;  %v749_v40 = vld [vmem:[%s1618_s10] sm:$0xff] }
  0x38   : > { %522 = vmatpush.msra.mxu0 %v505_v20  ;;  %v1057_v45 = vld [vmem:[%s1619_s11] ss:$0 sm:$0xff] }
  0x39   : > { %636 = vmatpush.msra.mxu3 %v625_v57  ;;  %775 = vmatpush.msra.mxu1 %v751_v38 }
  0x3a   : > { %523 = vmatpush.msra.mxu0 %v504_v21 }
  0x3b   : > { %637 = vmatpush.msra.mxu3 %v624_v60  ;;  %776 = vmatpush.msra.mxu1 %v750_v39 }
  0x3c   : > { %524 = vmatpush.msra.mxu0 %v503_v22 }
  0x3d   : > { %638 = vmatpush.msra.mxu3 %v623_v61  ;;  %777 = vmatpush.msra.mxu1 %v749_v40 }
  0x3e   : > { %525 = vmatpush.msra.mxu0 %v502_v23 }
  0x3f   : > { %639 = vmatpush.msra.mxu3 %v622_v62 }
  0x40   : > { %526 = vmatpush.msra.mxu0 %v501_v25 }
  0x41   : > { %640 = vmatpush.msra.mxu3 %v621_v1 }
  0x42   : > { %527 = vmatpush.msra.mxu0 %v500_v26 }
  0x43   : > { %641 = vmatpush.msra.mxu3 %v620_v2 }
  0x44   : > { %528 = vmatpush.msra.mxu0 %v499_v29 }
  0x45   : > { %642 = vmatpush.msra.mxu3 %v619_v5 }
  0x46   : > { %529 = vmatpush.msra.mxu0 %v498_v31 }
  0x47   : > { %643 = vmatpush.msra.mxu3 %v618_v8 }
  0x49   : > { %644 = vmatpush.msra.mxu3 %v617_v9 }
  0x4b   : > { %645 = vmatpush.msra.mxu3 %v616_v10 }
  0x4d   : > { %646 = vmatpush.msra.mxu3 %v615_v11 }
  0x4f   : > { %647 = vmatpush.msra.mxu3 %v614_v12 }
  0x99   : > { %v494_v30 = vpop.permute.xlu0 %493 }
  0x9a   : > { %vm495_vm2 = vcmp.eq.s32.totalorder %v491_v27, %v494_v30 }
  0x9b   : > { %985 = vmatmul.msk.f32.vlgmr.msra.gmra.mxu0 %vm495_vm2, %v1199_v34 }
  0xaa   : > { %v563_v32 = vpop.f32.mrf.mxu1 }
  0xab   : > { %v564_v33 = vadd.f32 %v1055_v28, %v563_v32 }
  0xad   : > { %987 = vmatmul.msk.f32.vlgmr.msra.gmra.mxu2 %vm542_vm1, %v564_v33 }
  0xb3   : > { %v677_v63 = vpop.f32.mrf.mxu1 }
 0x118   : > { %v531_v47 = vpop.f32.mrf.mxu0 }
 0x119   : > { %990 = vmatmul.msk.f32.vlgmr.msrb.gmra.mxu2 %vm542_vm1, %v531_v47 }
 0x130   : > { %v590_v48 = vpop.f32.mrf.mxu2 }
 0x131   : > { %v601_v49 = vsel %vm600_vm5, %v590_v48, -1e+30 }
 0x132   : > { %v603_v50 = vsel %vm602_vm6, %v601_v49, -inf }
 0x133   : > { %604 = vmax.xlane.f32.xlu0 %v603_v50 }
 0x19c   : > { %v700_v0 = vpop.f32.mrf.mxu2 }
 0x19d   : > { %v701_v3 = vadd.f32 %v700_v0, %v677_v63 }
 0x19f   : > { %v707_v6 = vadd.f32 %v1056_v4, %v701_v3 }
 0x1a1   : > { %v991_v16 = vmul.f32 -1.442695, %v707_v6 }
 0x1a6   : > { %v605_v51 = vpop.xlane.xlu0 %604 }
 0x1a7   : > { %v606_v52 = vsub.f32 %v601_v49, %v605_v51 }
 0x1a9   : > { %v607_v53 = vmul.f32 1.442695, %v606_v52 }
 0x1ab   : > { %1058 = vpow2.f32 %v607_v53 }
 0x1ac   : > { %1060 = vtanh.f32 %v707_v6 }
 0x1b1   : > { %v1059_v58 = vpop.eup %1058 }
 0x1b2   : > { %v609_v59 = vsel %vm602_vm6, %v1059_v58, 0.0  ;;  %v1061_v7 = vpop.eup %1060 }
 0x1b3   : > { %610 = vadd.xlane.f32.xlu1 %v609_v59 }
 0x1cc   : > { %734 = vrot.lane.b32.xlu1 %v1061_v7, %s1200_s24 }
 0x226   : > { %v611_v13 = vpop.xlane.xlu1 %610 }
 0x227   : > { %1062 = vrcp.f32 %v611_v13 }
 0x228   : > { %1064 = vpow2.f32 %v991_v16 }
 0x22d   : > { %v1063_v14 = vpop.eup %1062 }
 0x22e   : > { %v613_v15 = vmul.f32 %v1063_v14, %v1059_v58  ;;  %v1065_v17 = vpop.eup %1064 }
 0x22f   : > { %v711_v18 = vadd.f32 1.0, %v1065_v17 }
 0x230   : > { %988 = vmatmul.msk.f32.vlgmr.msra.gmra.mxu3 %vm602_vm6, %v613_v15  ;;  %797 = vst.msk [vmem:[%s1632_s19] sm:$0xff] %vm602_vm6, %v613_v15 }
 0x231   : > { %1066 = vrcp.f32 %v711_v18  ;;  %vm717_vm7 = vweird.f32 %v711_v18  ;;  %v723_v23 = vand.u32 2147483648, %v711_v18  ;;  %v721_v25 = vand.u32 2147483647, %v711_v18 }
 0x233   : > { %v724_v26 = vor.u32 1.1754944e-38, %v723_v23  ;;  %vm722_vm10 = vcmp.eq.f32.partialorder %v721_v25, 8.507059e+37 }
 0x237   : > { %v1067_v19 = vpop.eup %1066 }
 0x238   : > { %v713_v20 = vmul.f32 %v1067_v19, %v711_v18  ;;  %vm718_vm8 = vweird.f32 %v1067_v19 }
 0x239   : > { %vm719_vm9 = vmor %vm717_vm7, %vm718_vm8 }
 0x23a   : > { %v714_v21 = vsub.f32 1.0, %v713_v20 }
 0x23c   : > { %v715_v22 = vmul.f32 %v1067_v19, %v714_v21 }
 0x23e   : > { %v716_v24 = vadd.f32 %v1067_v19, %v715_v22  ;;  %v735_v30 = vpop.permute.xlu1 %734 }
 0x240   : > { %v720_v28 = vsel %vm719_vm9, %v1067_v19, %v716_v24 }
 0x241   : > { %v725_v29 = vsel %vm722_vm10, %v724_v26, %v720_v28 }
 0x242   : > { %v737_v31 = vmul.f32 %v735_v30, %v725_v29 }
 0x2b3   : > { %v649_v27 = vpop.f32.mrf.mxu3 }
 0x2b4   : > { %729 = vrot.lane.b32.xlu2 %v649_v27, %s1200_s24 }
 0x2bc   : > { %739 = vrot.lane.b32.xlu2 %v737_v31, %s1200_s24 }
 0x30e   : > { %v730_v32 = vpop.permute.xlu2 %729 }
 0x30f   : > { %v732_v33 = vmul.f32 %v730_v32, %v725_v29 }
 0x316   : > { %v740_v34 = vpop.permute.xlu2 %739 }
 0x317   : > { %v742_v35 = vadd.f32 %v740_v34, %v732_v33 }
 0x319   : > { %1068 = vtanh.f32 %v742_v35 }
 0x31f   : > { %v1069_v36 = vpop.eup %1068 }
 0x320   : > { %745 = vrot.lane.b32.xlu2 %v1069_v36, %s1200_s24  ;;  %s1201_s24 = smov 64  }
 0x37a   : > { %v746_v41 = vpop.permute.xlu2 %745 }
 0x37b   : > { %v748_v42 = vmul.f32 %v746_v41, %v725_v29 }
 0x37d   : > { %758 = vrot.lane.b32.xlu2 %v748_v42, %s1201_s24  ;;  %s838_s24 = sshll.u32 %s834_s18, 4  ;;  %s839_s24 = int_to_ptr.hbm [resolvable:$true] %s838_s24 }
 0x37e   : > { %s1088_s29 = sshra.s32 %s839_s24, 4  ;;  %s1089_s29 = int_to_ptr.hbm [resolvable:$true] %s1088_s29 }
 0x37f   : > { %s1090_s15 = scalar_lea.hbm %s1089_s29, 8  ;;  %p1095_p1 = scmp.lt.s32.totalorder %s1089_s29, %s1621_s13 }
 0x380   : > { %p1091_p12 = scmp.ne.s32.totalorder %s1089_s29, %s1090_s15  ;;  %p1096_p2 = scmp.lt.s32.totalorder %s1094_s17, %s1090_s15 }
 0x382   : > { %p1092_p13 = pnand %p1091_p12, %p1317_p5  ;;  %p1097_p3 = por %p1096_p2, %p1095_p1 }
 0x384   : > { %p1093_p0 = pneg %p1092_p13 }
 0x386   : > { %p1098_p4 = pnand %p1097_p3, %p1093_p0 }
 0x3d7   : > { %v759_v43 = vpop.permute.xlu2 %758 }
 0x3d8   : > { %v794_v44 = vsel %vm542_vm1, %v759_v43, %v742_v35  ;;  %798 = vst.msk [vmem:[#allocation2] sm:$0xff] %vm542_vm1, %v759_v43  ;;  %992 = vmatmul.msk.f32.vlgmr.msra.gmra.mxu1 %vm542_vm1, %v759_v43 }
 0x3d9   : > { %796 = vst.msk [vmem:[%s1645_s21] sm:$0xff] %vm795_vm11, %v794_v44  ;;  %s1539_s21 = scalar_lea.sflag [#allocation6], %s804_s20 }
 0x455   : > { %v779_v46 = vpop.f32.mrf.mxu1 }
 0x456   : > { %v780_v47 = vadd.f32 %v1057_v45, %v779_v46 }
 0x458   : > { %782 = vmax.xlane.f32.xlu2 %v780_v47 }
 0x4cb   : > { %v783_v48 = vpop.xlane.xlu2 %782 }
 0x4cc   : > { %v784_v49 = vsub.f32 %v780_v47, %v783_v48 }
 0x4ce   : > { %v785_v50 = vmul.f32 1.442695, %v784_v49 }
 0x4d0   : > { %1070 = vpow2.f32 %v785_v50 }
 0x4d6   : > { %v1071_v51 = vpop.eup %1070 }
 0x4d7   : > { %787 = vadd.xlane.f32.xlu1 %v1071_v51 }
 0x4d8   : > { %1101 = shalt.err (!%p1098_p4)
}
 0x4d9   : > { %1002 = dma.vmem_to_hbm [thread:$0]  (%p1317_p5), %s837_s28, 128, %s839_s24, %s1539_s21  }
 0x4da   : > { %s848_s19 = scalar_lea.hbm %s1622_s14, %s1530_s16  ;;  %s1647_s25 = scalar_lea.vmem [#allocation7], %s1331_s26 }
 0x4db   : > { %s850_s0 = sshll.u32 %s1647_s25, 4  ;;  %s852_s27 = sshll.u32 %s848_s19, 4  ;;  %s851_s0 = int_to_ptr.vmem [resolvable:$true] %s850_s0  ;;  %s853_s27 = int_to_ptr.hbm [resolvable:$true] %s852_s27 }
 0x4dc   : > { %s1116_s29 = sshra.s32 %s853_s27, 4  ;;  %s1122_s28 = scalar_lea.hbm %s1622_s14, 48  ;;  %s1117_s29 = int_to_ptr.hbm [resolvable:$true] %s1116_s29 }
 0x4dd   : > { %s1118_s15 = scalar_lea.hbm %s1117_s29, 8  ;;  %p1123_p10 = scmp.lt.s32.totalorder %s1117_s29, %s1622_s14 }
 0x4de   : > { %p1119_p7 = scmp.ne.s32.totalorder %s1117_s29, %s1118_s15  ;;  %p1124_p11 = scmp.lt.s32.totalorder %s1122_s28, %s1118_s15 }
 0x4e0   : > { %p1120_p8 = pnand %p1119_p7, %p1317_p5  ;;  %p1125_p12 = por %p1124_p11, %p1123_p10 }
 0x4e2   : > { %p1121_p9 = pneg %p1120_p8 }
 0x4e4   : > { %p1126_p13 = pnand %p1125_p12, %p1121_p9 }
 0x4e6   : > { %1129 = shalt.err (!%p1126_p13)
}
 0x4e7   : > { %1003 = dma.vmem_to_hbm [thread:$0]  (%p1317_p5), %s851_s0, 128, %s853_s27, %s1539_s21  }
 0x4e8   : > { %s820_s1 = scalar_lea.hbm %s1620_s12, %s1530_s16  ;;  %s1648_s19 = scalar_lea.vmem [#allocation3], %s1331_s26 }
 0x4e9   : > { %s822_s25 = sshll.u32 %s1648_s19, 4  ;;  %s824_s29 = sshll.u32 %s820_s1, 4  ;;  %s823_s25 = int_to_ptr.vmem [resolvable:$true] %s822_s25  ;;  %s825_s29 = int_to_ptr.hbm [resolvable:$true] %s824_s29 }
 0x4ea   : > { %s1649_s15 = smov %s1648_s19  ;;  %s1650_s17 = sand.u32 1, %s1188_s30  }
 0x4eb   : > { %s800_s22 = scalar_lea.sflag [#allocation4], %s1650_s17  ;;  %s1144_s0 = sshra.s32 %s825_s29, 4  ;;  %s1145_s0 = int_to_ptr.hbm [resolvable:$true] %s1144_s0 }
 0x4ec   : > { %s1146_s21 = scalar_lea.hbm %s1145_s0, 8  ;;  %s1150_s28 = scalar_lea.hbm %s1620_s12, 48 }
 0x4ed   : > { %p1147_p0 = scmp.ne.s32.totalorder %s1145_s0, %s1146_s21  ;;  %p1151_p3 = scmp.lt.s32.totalorder %s1145_s0, %s1620_s12 }
 0x4ee   : > { %p1152_p4 = scmp.lt.s32.totalorder %s1150_s28, %s1146_s21 }
 0x4ef   : > { %p1148_p1 = pnand %p1147_p0, %p1317_p5 }
 0x4f0   : > { %p1153_p7 = por %p1152_p4, %p1151_p3 }
 0x4f1   : > { %p1149_p2 = pneg %p1148_p1 }
 0x4f3   : > { %p1154_p8 = pnand %p1153_p7, %p1149_p2 }
 0x54a   : > { %v788_v52 = vpop.xlane.xlu1 %787 }
 0x54b   : > { %1072 = vlog2.f32 %v788_v52 }
 0x551   : > { %v1073_v53 = vpop.eup %1072 }
 0x552   : > { %v790_v54 = vmul.f32 0.6931472, %v1073_v53 }
 0x554   : > { %v791_v55 = vsub.f32 %v784_v49, %v790_v54 }
 0x556   : > { %792 = vst [vmem:[%s1649_s15] sm:$0xff] %v791_v55 }
 0x557   : > { %1157 = shalt.err (!%p1154_p8)
}
 0x558   : > { %1001 = dma.vmem_to_hbm [thread:$0]  (%p1317_p5), %s823_s25, 128, %s825_s29, %s800_s22  }
 0x559 PF: > { %s1651_s26 = sld [smem:[#allocation12_spill]] }
 0x55a   : > { %s1652_s20 = sld [smem:[#allocation10_spill]] }
 0x55f   : > { %p1017_p9 = scmp.ge.s32.totalorder %s1651_s26, 2 }
 0x560   : > { %s864_s19 = sand.u32 1, %s1652_s20  }
 0x561   : > { %p1008_p10 = pnand %p1017_p9, %p1321_p6  ;;  %s865_s15 = scalar_lea.sflag [#allocation4], %s864_s19 }
 0x563   : > { %p1009_p11 = pneg %p1008_p10 }
 0x565   : > { %1175 = dma.done.wait (%p1009_p11), %s865_s15, 128  }
 0x566   : > { %1177 = vsyncadd (%p1009_p11), %s865_s15, 4294967168  ;;  %s1654_s17 = sadd.s32 4294967294, %s1651_s26  }
 0x567   : > { %s874_s0 = sand.u32 1, %s1654_s17  }
 0x568   : > { %s875_s21 = scalar_lea.sflag [#allocation6], %s874_s0 }
 0x569   : > { %1179 = dma.done.wait (%p1009_p11), %s875_s21, 256  }
 0x56a   : > { %1181 = vsyncadd (%p1009_p11), %s875_s21, 4294967040  ;;  %s1655_s16 = sld [smem:[#allocation13_spill]]  ;;  %s1658_s29 = smov %s1188_s30 }
 0x56b   : > { %s1656_s23 = sld [smem:[#allocation11_spill]] }
 0x56c   : > { %s1657_s15 = sld [smem:[#allocation14_spill]] }
 0x570   : > { %p28_p5 = scmp.ge.s32.totalorder %s1655_s16, 8  }
 0x571   : > { %s1659_s30 = smov %s1656_s23 }
 0x572   :  { %30 = sbr.rel (!%p28_p5) target bundleno = 8 (0x8), region = 139 }
 0x577   :  { %891 = vsyncpa [#allocation4], 1 }
 0x578   :  { %893 = vsyncpa [#allocation4 + $0x1], 1 }
 0x579   :  { %894 = vsyncpa [#allocation6], 1 }
 0x57a   :  { %896 = vsyncpa [#allocation6 + $0x1], 1 }

</bundles_post_ra>
